<compile_context>
chip_gen: v5e
topology: v5e:2x2
jax: 0.10.0
libtpu: 0.0.40
codegen_flags: <defaults>
</compile_context>

<pallas_src>
import functools
import math

import jax
import jax.numpy as jnp
import numpy as np
from jax.experimental import pallas as pl
from jax.experimental.pallas import tpu as pltpu


def _attention_kernel(key_ref, value_ref, query_ref, wqp_ref, wvp_ref,
                      bf_ref, gamma_ref, beta_ref, out_ref, *attn_out_ref,
                      h, eps, approx_recip):
    bt, sk, d = key_ref.shape
    sq = query_ref.shape[1]

    k3 = key_ref[...]                              # (bt, sk, d)
    q3 = query_ref[...]                            # (bt, sq, d) == residual
    q2 = q3.reshape(bt * sq, d)                    # row-flattened for the MXU
    v2 = value_ref[...].reshape(bt * sk, d)

    # Two fused, wide MXU matmuls: every per-head projection (and the residual
    # leg of the final linear) is computed here, outside the head loop.
    qp = jnp.dot(q2, wqp_ref[...], preferred_element_type=jnp.float32)   # (bt*sq, (h+1)*d)
    pvf = jnp.dot(v2, wvp_ref[...], preferred_element_type=jnp.float32)  # (bt*sk, h*d)

    # Residual leg of the final linear (first D lanes of the fused q-projection).
    final = qp[:, :d].reshape(bt, sq, d) + bf_ref[...]

    # TODO(synk): attn_dropout / residual_dropout (p=0.1) are inference-mode
    # identities and are intentionally not applied.
    for head in range(h):                          # static unroll over heads
        # Per-head view of the fused projection (lane slice, no extra matmul).
        qm_h = qp[:, (head + 1) * d:(head + 2) * d].reshape(bt, sq, d)
        # scores_h = q @ (Wq_h Wk_h^T / sqrt(dh)) @ k^T  (scale folded in wqp)
        scores = jnp.einsum('bqd,bkd->bqk', qm_h, k3,
                            preferred_element_type=jnp.float32)

        # numerically-stable softmax over the lane axis (Sk)
        scores = scores - jnp.max(scores, axis=-1, keepdims=True)
        e = jnp.exp(scores)
        attn = e * pl.reciprocal(jnp.sum(e, axis=-1, keepdims=True),
                                 approx=approx_recip)
        if attn_out_ref:                           # optional HBM writeback
            attn_out_ref[0][head] = attn           # (bt, sq, sk)

        # Context contribution folded straight into the final linear:
        #   attn_h @ (v @ (Wv_h @ Wf_ctx_h))  — pvf already holds v @ Vf_h.
        pvf_h = pvf[:, head * d:(head + 1) * d].reshape(bt, sk, d)
        final = final + jnp.einsum('bqk,bkd->bqd', attn, pvf_h,
                                   preferred_element_type=jnp.float32)

    x = final + q3                                 # residual add

    # LayerNorm — two-pass (x - mean) variance for numerical safety.
    inv_d = 1.0 / d
    mean = jnp.sum(x, axis=-1, keepdims=True) * inv_d
    xc = x - mean
    var = jnp.sum(xc * xc, axis=-1, keepdims=True) * inv_d
    out_ref[...] = (xc * jax.lax.rsqrt(var + eps)) * gamma_ref[...] + beta_ref[...]


def _vmem_limit_bytes():
    """Chip-aware scoped-VMEM limit (v5e/v6e: large; v7x fallback: 64 MiB)."""
    try:
        cap = int(pltpu.get_tpu_info().vmem_capacity_bytes)
    except Exception:
        cap = 64 * 1024 * 1024          # conservative: v7x physical VMEM
    return max(32 * 1024 * 1024, min(int(0.75 * cap), 112 * 1024 * 1024))


def _pick_block_b(B, Sq, Sk, D, h, with_attn, vmem_limit):
    """Honest VMEM-based batch-tile sizing."""
    # Pipelined I/O blocks (double-buffered by the pallas_call pipeline).
    io_per_b = (2 * Sk * D                     # key + value
                + 2 * Sq * D                   # query + result
                + (h * Sq * Sk if with_attn else 0))
    # In-kernel intermediates (single copies): qp, pvf, scores/exp/attn, final.
    interm_per_b = ((h + 1) * Sq * D + h * Sk * D + 3 * Sq * Sk + 2 * Sq * D)
    per_b_bytes = 4 * (2 * io_per_b + interm_per_b)
    # Constant weight blocks stay resident (and are double-buffered).
    weight_bytes = 2 * 4 * ((2 * h + 1) * D * D + 3 * D)

    budget = max(1 << 20, int(0.6 * vmem_limit) - weight_bytes)
    cap = max(1, budget // per_b_bytes)
    block_b = min(B, cap)

    # Prefer >=2 grid steps (megacore / dual-TC) only when the halved block
    # still fills the MXU M dim (>=256 rows), or when M can't be filled anyway.
    if B >= 2:
        half = max(1, B // 2)
        if half * Sq >= 256 or block_b * Sq < 256:
            block_b = min(block_b, half)

    # Largest divisor of B not exceeding block_b (ragged batch tiles are not
    # supported).  Note: an awkward prime B can degrade this to block_b == 1.
    while B % block_b:
        block_b -= 1
    return block_b


def attention_forward(key, value, query, params, *, h, block_b=None,
                      return_attn=True, approx_softmax=False):
    """Pallas implementation of Attention.forward (dropout disabled).

    Returns (result (B, Sq, D), attns (h*B, Sq, Sk)) when return_attn=True
    (matching the PyTorch module), otherwise just result.
    """
    B, Sk, D = key.shape
    Sq = query.shape[1]
    assert D % h == 0
    dh = D // h
    scale = 1.0 / math.sqrt(dh)

    wk_t, wv_t, wq_t, wf_t, bf, gamma, beta = params

    # ---- one-time weight preparation (outside the kernel) ------------------
    hi = jax.lax.Precision.HIGHEST
    wqh = wq_t.reshape(D, h, dh)            # per-head column groups
    wkh = wk_t.reshape(D, h, dh)
    wvh = wv_t.reshape(D, h, dh)
    # Mqk_h = Wq_h @ Wk_h^T / sqrt(dh)  -> (h, D, D)
    mqk = jnp.einsum('dhe,fhe->hdf', wqh, wkh, precision=hi) * scale
    # Split the final linear: residual leg + per-head context legs.
    wf_res = wf_t[:D, :]                                    # (D, D)
    wf_ctx = wf_t[D:, :].reshape(h, dh, D)
    # Vf_h = Wv_h @ Wf_ctx_h -> (h, D, D)
    vfh = jnp.einsum('dhe,heg->hdg', wvh, wf_ctx, precision=hi)

    # Fuse into two wide weight matrices (head-major along lanes).
    mqk_flat = jnp.transpose(mqk, (1, 0, 2)).reshape(D, h * D)
    wqp = jnp.concatenate([wf_res, mqk_flat], axis=1)       # (D, (h+1)*D)
    wvp = jnp.transpose(vfh, (1, 0, 2)).reshape(D, h * D)   # (D, h*D)

    bf2 = bf.reshape(1, D)
    gamma2 = gamma.reshape(1, D)
    beta2 = beta.reshape(1, D)

    # ---- batch tiling -------------------------------------------------------
    vmem_limit = _vmem_limit_bytes()
    if block_b is None:
        block_b = _pick_block_b(B, Sq, Sk, D, h, return_attn, vmem_limit)
    block_b = max(1, min(block_b, B))
    while B % block_b:
        block_b -= 1
    grid = (B // block_b,)

    kernel = functools.partial(_attention_kernel, h=h, eps=1e-5,
                               approx_recip=approx_softmax)

    in_specs = [
        pl.BlockSpec((block_b, Sk, D), lambda b: (b, 0, 0)),     # key
        pl.BlockSpec((block_b, Sk, D), lambda b: (b, 0, 0)),     # value
        pl.BlockSpec((block_b, Sq, D), lambda b: (b, 0, 0)),     # query
        pl.BlockSpec((D, (h + 1) * D), lambda b: (0, 0)),        # fused q-side W
        pl.BlockSpec((D, h * D), lambda b: (0, 0)),              # fused v-side W
        pl.BlockSpec((1, D), lambda b: (0, 0)),                  # b_final
        pl.BlockSpec((1, D), lambda b: (0, 0)),                  # ln gamma
        pl.BlockSpec((1, D), lambda b: (0, 0)),                  # ln beta
    ]
    out_specs = [pl.BlockSpec((block_b, Sq, D), lambda b: (b, 0, 0))]
    out_shapes = [jax.ShapeDtypeStruct((B, Sq, D), jnp.float32)]
    if return_attn:
        out_specs.append(pl.BlockSpec((h, block_b, Sq, Sk),
                                      lambda b: (0, b, 0, 0)))
        out_shapes.append(jax.ShapeDtypeStruct((h, B, Sq, Sk), jnp.float32))

    grid_spec = pltpu.PrefetchScalarGridSpec(
        num_scalar_prefetch=0,
        grid=grid,
        in_specs=in_specs,
        out_specs=out_specs,
    )

    outs = pl.pallas_call(
        kernel,
        grid_spec=grid_spec,
        out_shape=out_shapes,
        compiler_params=pltpu.CompilerParams(
            dimension_semantics=("parallel",),
            vmem_limit_bytes=vmem_limit),
    )(key, value, query, wqp, wvp, bf2, gamma2, beta2)

    result = outs[0]
    if return_attn:
        # PyTorch returns attns as (h*B, Sq, Sk), head-major.
        attns = outs[1].reshape(h * B, Sq, Sk)
        return result, attns
    return result


def init_params(rng, num_hidden):
    """Deterministic xavier-normal-style init (gain=1 for 'linear')."""
    D = num_hidden
    k1, k2, k3, k4, k5 = jax.random.split(rng, 5)

    def xavier(key, out_dim, in_dim):
        std = math.sqrt(2.0 / (in_dim + out_dim))
        return std * jax.random.normal(key, (out_dim, in_dim), jnp.float32)

    Wk = xavier(k1, D, D)          # torch weight layout (out, in)
    Wv = xavier(k2, D, D)
    Wq = xavier(k3, D, D)
    Wf = xavier(k4, D, 2 * D)
    bound = 1.0 / math.sqrt(2 * D)
    bf = jax.random.uniform(k5, (D,), jnp.float32, -bound, bound)
    gamma = jnp.ones((D,), jnp.float32)
    beta = jnp.zeros((D,), jnp.float32)
    # pre-transpose so the math is x @ W (== torch x @ W.T)
    return (Wk.T, Wv.T, Wq.T, Wf.T, bf, gamma, beta)


def _reference(key, value, query, params, *, h):
    """Pure-JAX reference mirroring the PyTorch forward (dropout = identity)."""
    wk_t, wv_t, wq_t, wf_t, bf, gamma, beta = params
    B, Sk, D = key.shape
    Sq = query.shape[1]
    dh = D // h
    residual = query
    k = (key @ wk_t).reshape(B, Sk, h, dh)
    v = (value @ wv_t).reshape(B, Sk, h, dh)
    q = (query @ wq_t).reshape(B, Sq, h, dh)
    k = jnp.transpose(k, (2, 0, 1, 3)).reshape(h * B, Sk, dh)
    v = jnp.transpose(v, (2, 0, 1, 3)).reshape(h * B, Sk, dh)
    q = jnp.transpose(q, (2, 0, 1, 3)).reshape(h * B, Sq, dh)
    attn = jnp.einsum('bqd,bkd->bqk', q, k) / math.sqrt(dh)
    attn = jax.nn.softmax(attn, axis=-1)
    res = jnp.einsum('bqk,bkd->bqd', attn, v)
    res = res.reshape(h, B, Sq, dh)
    res = jnp.transpose(res, (1, 2, 0, 3)).reshape(B, Sq, D)
    res = jnp.concatenate([residual, res], axis=-1)
    res = res @ wf_t + bf
    res = res + residual
    mean = jnp.mean(res, axis=-1, keepdims=True)
    var = jnp.mean((res - mean) ** 2, axis=-1, keepdims=True)
    res = (res - mean) / jnp.sqrt(var + 1e-5) * gamma + beta
    return res, attn


if __name__ == "__main__":
    B, Sk, Sq, D, H = 2, 8, 8, 32, 4

    root = jax.random.PRNGKey(0)
    kparam, kk, kv, kq = jax.random.split(root, 4)

    params = init_params(kparam, D)
    key_in = jax.random.normal(kk, (B, Sk, D), jnp.float32)
    value_in = jax.random.normal(kv, (B, Sk, D), jnp.float32)
    query_in = jax.random.normal(kq, (B, Sq, D), jnp.float32)

    # Full forward (result + attention probs), matching the PyTorch module.
    result, attns = attention_forward(key_in, value_in, query_in, params, h=H)
    result = jax.block_until_ready(result)
    attns = jax.block_until_ready(attns)

    # Attn-free fast path (no (h,B,Sq,Sk) HBM writeback).
    result_only = attention_forward(key_in, value_in, query_in, params, h=H,
                                    return_attn=False)
    result_only = jax.block_until_ready(result_only)

    ref_result, ref_attns = _reference(key_in, value_in, query_in, params, h=H)
    # atol relaxed slightly (2e-5) to allow for f32 rounding differences from
    # the pre-merged per-head weights (mathematically identical association).
    np.testing.assert_allclose(np.asarray(result), np.asarray(ref_result),
                               rtol=1e-5, atol=2e-5)
    np.testing.assert_allclose(np.asarray(attns), np.asarray(ref_attns),
                               rtol=1e-5, atol=2e-5)
    np.testing.assert_allclose(np.asarray(result_only), np.asarray(ref_result),
                               rtol=1e-5, atol=2e-5)

    print("KERNEL_OK")
</pallas_src>

<mosaic_0001>
module attributes {stable_mosaic.version = 11 : i64} {
  func.func @_attention_kernel(%arg0: i32, %arg1: memref<1x8x32xf32, #tpu.memory_space<vmem>>, %arg2: memref<1x8x32xf32, #tpu.memory_space<vmem>>, %arg3: memref<1x8x32xf32, #tpu.memory_space<vmem>>, %arg4: memref<32x160xf32, #tpu.memory_space<vmem>>, %arg5: memref<32x128xf32, #tpu.memory_space<vmem>>, %arg6: memref<1x32xf32, #tpu.memory_space<vmem>>, %arg7: memref<1x32xf32, #tpu.memory_space<vmem>>, %arg8: memref<1x32xf32, #tpu.memory_space<vmem>>, %arg9: memref<1x8x32xf32, #tpu.memory_space<vmem>>, %arg10: memref<4x1x8x8xf32, #tpu.memory_space<vmem>>) attributes {dimension_semantics = [#tpu.dimension_semantics<parallel>], iteration_bounds = array<i64: 2>, scalar_prefetch = 0 : i64, scratch_operands = 0 : i64, tpu.core_type = #tpu.core_type<tc>, window_params = [{transform_indices = @transform_0, window_bounds = array<i64: 1, 8, 32>}, {transform_indices = @transform_1, window_bounds = array<i64: 1, 8, 32>}, {transform_indices = @transform_2, window_bounds = array<i64: 1, 8, 32>}, {pipeline_mode = #tpu.pipeline_mode<synchronous>, transform_indices = @transform_3, window_bounds = array<i64: 32, 160>}, {pipeline_mode = #tpu.pipeline_mode<synchronous>, transform_indices = @transform_4, window_bounds = array<i64: 32, 128>}, {pipeline_mode = #tpu.pipeline_mode<synchronous>, transform_indices = @transform_5, window_bounds = array<i64: 1, 32>}, {pipeline_mode = #tpu.pipeline_mode<synchronous>, transform_indices = @transform_6, window_bounds = array<i64: 1, 32>}, {pipeline_mode = #tpu.pipeline_mode<synchronous>, transform_indices = @transform_7, window_bounds = array<i64: 1, 32>}, {transform_indices = @transform_8, window_bounds = array<i64: 1, 8, 32>}, {transform_indices = @transform_9, window_bounds = array<i64: 4, 1, 8, 8>}]} {
    %c0 = arith.constant 0 : index
    %c0_0 = arith.constant 0 : index
    %c0_1 = arith.constant 0 : index
    %0 = vector.load %arg1[%c0, %c0_0, %c0_1] : memref<1x8x32xf32, #tpu.memory_space<vmem>>, vector<1x8x32xf32>
    %c0_2 = arith.constant 0 : index
    %c0_3 = arith.constant 0 : index
    %c0_4 = arith.constant 0 : index
    %1 = vector.load %arg3[%c0_2, %c0_3, %c0_4] : memref<1x8x32xf32, #tpu.memory_space<vmem>>, vector<1x8x32xf32>
    %2 = vector.shape_cast %1 : vector<1x8x32xf32> to vector<8x32xf32>
    %c0_5 = arith.constant 0 : index
    %c0_6 = arith.constant 0 : index
    %c0_7 = arith.constant 0 : index
    %3 = vector.load %arg2[%c0_5, %c0_6, %c0_7] : memref<1x8x32xf32, #tpu.memory_space<vmem>>, vector<1x8x32xf32>
    %4 = vector.shape_cast %3 : vector<1x8x32xf32> to vector<8x32xf32>
    %c0_8 = arith.constant 0 : index
    %c0_9 = arith.constant 0 : index
    %5 = vector.load %arg4[%c0_8, %c0_9] : memref<32x160xf32, #tpu.memory_space<vmem>>, vector<32x160xf32>
    %cst = arith.constant dense<0.000000e+00> : vector<8x160xf32>
    %6 = tpu.matmul %2, %5, %cst {dimension_numbers = #tpu.dot_dimension_numbers<[1], [0], [0], [1], [0, 0, 1, 1], [], []>} : vector<8x32xf32>, vector<32x160xf32>, vector<8x160xf32> -> vector<8x160xf32>
    %c0_10 = arith.constant 0 : index
    %c0_11 = arith.constant 0 : index
    %7 = vector.load %arg5[%c0_10, %c0_11] : memref<32x128xf32, #tpu.memory_space<vmem>>, vector<32x128xf32>
    %cst_12 = arith.constant dense<0.000000e+00> : vector<8x128xf32>
    %8 = tpu.matmul %4, %7, %cst_12 {dimension_numbers = #tpu.dot_dimension_numbers<[1], [0], [0], [1], [0, 0, 1, 1], [], []>} : vector<8x32xf32>, vector<32x128xf32>, vector<8x128xf32> -> vector<8x128xf32>
    %9 = vector.extract_strided_slice %6 {offsets = [0, 0], sizes = [8, 32], strides = [1, 1]} : vector<8x160xf32> to vector<8x32xf32>
    %10 = vector.shape_cast %9 : vector<8x32xf32> to vector<1x8x32xf32>
    %c0_13 = arith.constant 0 : index
    %c0_14 = arith.constant 0 : index
    %11 = vector.load %arg6[%c0_13, %c0_14] : memref<1x32xf32, #tpu.memory_space<vmem>>, vector<1x32xf32>
    %12 = vector.shape_cast %11 : vector<1x32xf32> to vector<1x1x32xf32>
    %13 = vector.broadcast %12 : vector<1x1x32xf32> to vector<1x8x32xf32>
    %14 = arith.addf %10, %13 : vector<1x8x32xf32>
    %15 = vector.extract_strided_slice %6 {offsets = [0, 32], sizes = [8, 32], strides = [1, 1]} : vector<8x160xf32> to vector<8x32xf32>
    %16 = vector.shape_cast %15 : vector<8x32xf32> to vector<1x8x32xf32>
    "tpu.trace_start"() <{level = 10 : i32, message = "bqd,bkd->bqk"}> : () -> ()
    %cst_15 = arith.constant dense<0.000000e+00> : vector<1x8x8xf32>
    %17 = tpu.matmul %16, %0, %cst_15 {dimension_numbers = #tpu.dot_dimension_numbers<[2], [2], [1], [1], [0, 0, 0, 1, 1, 1], [0], [0]>} : vector<1x8x32xf32>, vector<1x8x32xf32>, vector<1x8x8xf32> -> vector<1x8x8xf32>
    "tpu.trace_stop"() : () -> ()
    %cst_16 = arith.constant dense<0xFF800000> : vector<1x8xf32>
    %18 = vector.multi_reduction <maximumf>, %17, %cst_16 [2] : vector<1x8x8xf32> to vector<1x8xf32>
    %19 = vector.shape_cast %18 : vector<1x8xf32> to vector<1x8x1xf32>
    %20 = vector.broadcast %19 : vector<1x8x1xf32> to vector<1x8x8xf32>
    %21 = arith.subf %17, %20 : vector<1x8x8xf32>
    %22 = math.exp %21 : vector<1x8x8xf32>
    %cst_17 = arith.constant dense<0.000000e+00> : vector<1x8xf32>
    %23 = vector.multi_reduction <add>, %22, %cst_17 [2] : vector<1x8x8xf32> to vector<1x8xf32>
    %24 = vector.shape_cast %23 : vector<1x8xf32> to vector<1x8x1xf32>
    %25 = tpu.reciprocal %24 : vector<1x8x1xf32> -> vector<1x8x1xf32>
    %26 = vector.broadcast %25 : vector<1x8x1xf32> to vector<1x8x8xf32>
    %27 = arith.mulf %22, %26 : vector<1x8x8xf32>
    %c0_18 = arith.constant 0 : index
    %c0_19 = arith.constant 0 : index
    %c0_20 = arith.constant 0 : index
    %c0_21 = arith.constant 0 : index
    %28 = vector.load %arg10[%c0_18, %c0_19, %c0_20, %c0_21] : memref<4x1x8x8xf32, #tpu.memory_space<vmem>>, vector<1x1x8x8xf32>
    %29 = vector.shape_cast %28 : vector<1x1x8x8xf32> to vector<1x8x8xf32>
    %30 = vector.shape_cast %27 : vector<1x8x8xf32> to vector<1x1x8x8xf32>
    tpu.vector_store %arg10[%c0_18, %c0_19, %c0_20, %c0_21], %30 {strides = array<i32>} : memref<4x1x8x8xf32, #tpu.memory_space<vmem>>, vector<1x1x8x8xf32>,
    %31 = vector.extract_strided_slice %8 {offsets = [0, 0], sizes = [8, 32], strides = [1, 1]} : vector<8x128xf32> to vector<8x32xf32>
    %32 = vector.shape_cast %31 : vector<8x32xf32> to vector<1x8x32xf32>
    "tpu.trace_start"() <{level = 10 : i32, message = "bqk,bkd->bqd"}> : () -> ()
    %cst_22 = arith.constant dense<0.000000e+00> : vector<1x8x32xf32>
    %33 = tpu.matmul %27, %32, %cst_22 {dimension_numbers = #tpu.dot_dimension_numbers<[2], [1], [1], [2], [0, 0, 0, 1, 1, 2], [0], [0]>} : vector<1x8x8xf32>, vector<1x8x32xf32>, vector<1x8x32xf32> -> vector<1x8x32xf32>
    "tpu.trace_stop"() : () -> ()
    %34 = arith.addf %14, %33 : vector<1x8x32xf32>
    %35 = vector.extract_strided_slice %6 {offsets = [0, 64], sizes = [8, 32], strides = [1, 1]} : vector<8x160xf32> to vector<8x32xf32>
    %36 = vector.shape_cast %35 : vector<8x32xf32> to vector<1x8x32xf32>
    "tpu.trace_start"() <{level = 10 : i32, message = "bqd,bkd->bqk"}> : () -> ()
    %cst_23 = arith.constant dense<0.000000e+00> : vector<1x8x8xf32>
    %37 = tpu.matmul %36, %0, %cst_23 {dimension_numbers = #tpu.dot_dimension_numbers<[2], [2], [1], [1], [0, 0, 0, 1, 1, 1], [0], [0]>} : vector<1x8x32xf32>, vector<1x8x32xf32>, vector<1x8x8xf32> -> vector<1x8x8xf32>
    "tpu.trace_stop"() : () -> ()
    %cst_24 = arith.constant dense<0xFF800000> : vector<1x8xf32>
    %38 = vector.multi_reduction <maximumf>, %37, %cst_24 [2] : vector<1x8x8xf32> to vector<1x8xf32>
    %39 = vector.shape_cast %38 : vector<1x8xf32> to vector<1x8x1xf32>
    %40 = vector.broadcast %39 : vector<1x8x1xf32> to vector<1x8x8xf32>
    %41 = arith.subf %37, %40 : vector<1x8x8xf32>
    %42 = math.exp %41 : vector<1x8x8xf32>
    %cst_25 = arith.constant dense<0.000000e+00> : vector<1x8xf32>
    %43 = vector.multi_reduction <add>, %42, %cst_25 [2] : vector<1x8x8xf32> to vector<1x8xf32>
    %44 = vector.shape_cast %43 : vector<1x8xf32> to vector<1x8x1xf32>
    %45 = tpu.reciprocal %44 : vector<1x8x1xf32> -> vector<1x8x1xf32>
    %46 = vector.broadcast %45 : vector<1x8x1xf32> to vector<1x8x8xf32>
    %47 = arith.mulf %42, %46 : vector<1x8x8xf32>
    %c1 = arith.constant 1 : index
    %c0_26 = arith.constant 0 : index
    %c0_27 = arith.constant 0 : index
    %c0_28 = arith.constant 0 : index
    %48 = vector.load %arg10[%c1, %c0_26, %c0_27, %c0_28] : memref<4x1x8x8xf32, #tpu.memory_space<vmem>>, vector<1x1x8x8xf32>
    %49 = vector.shape_cast %48 : vector<1x1x8x8xf32> to vector<1x8x8xf32>
    %50 = vector.shape_cast %47 : vector<1x8x8xf32> to vector<1x1x8x8xf32>
    tpu.vector_store %arg10[%c1, %c0_26, %c0_27, %c0_28], %50 {strides = array<i32>} : memref<4x1x8x8xf32, #tpu.memory_space<vmem>>, vector<1x1x8x8xf32>,
    %51 = vector.extract_strided_slice %8 {offsets = [0, 32], sizes = [8, 32], strides = [1, 1]} : vector<8x128xf32> to vector<8x32xf32>
    %52 = vector.shape_cast %51 : vector<8x32xf32> to vector<1x8x32xf32>
    "tpu.trace_start"() <{level = 10 : i32, message = "bqk,bkd->bqd"}> : () -> ()
    %cst_29 = arith.constant dense<0.000000e+00> : vector<1x8x32xf32>
    %53 = tpu.matmul %47, %52, %cst_29 {dimension_numbers = #tpu.dot_dimension_numbers<[2], [1], [1], [2], [0, 0, 0, 1, 1, 2], [0], [0]>} : vector<1x8x8xf32>, vector<1x8x32xf32>, vector<1x8x32xf32> -> vector<1x8x32xf32>
    "tpu.trace_stop"() : () -> ()
    %54 = arith.addf %34, %53 : vector<1x8x32xf32>
    %55 = vector.extract_strided_slice %6 {offsets = [0, 96], sizes = [8, 32], strides = [1, 1]} : vector<8x160xf32> to vector<8x32xf32>
    %56 = vector.shape_cast %55 : vector<8x32xf32> to vector<1x8x32xf32>
    "tpu.trace_start"() <{level = 10 : i32, message = "bqd,bkd->bqk"}> : () -> ()
    %cst_30 = arith.constant dense<0.000000e+00> : vector<1x8x8xf32>
    %57 = tpu.matmul %56, %0, %cst_30 {dimension_numbers = #tpu.dot_dimension_numbers<[2], [2], [1], [1], [0, 0, 0, 1, 1, 1], [0], [0]>} : vector<1x8x32xf32>, vector<1x8x32xf32>, vector<1x8x8xf32> -> vector<1x8x8xf32>
    "tpu.trace_stop"() : () -> ()
    %cst_31 = arith.constant dense<0xFF800000> : vector<1x8xf32>
    %58 = vector.multi_reduction <maximumf>, %57, %cst_31 [2] : vector<1x8x8xf32> to vector<1x8xf32>
    %59 = vector.shape_cast %58 : vector<1x8xf32> to vector<1x8x1xf32>
    %60 = vector.broadcast %59 : vector<1x8x1xf32> to vector<1x8x8xf32>
    %61 = arith.subf %57, %60 : vector<1x8x8xf32>
    %62 = math.exp %61 : vector<1x8x8xf32>
    %cst_32 = arith.constant dense<0.000000e+00> : vector<1x8xf32>
    %63 = vector.multi_reduction <add>, %62, %cst_32 [2] : vector<1x8x8xf32> to vector<1x8xf32>
    %64 = vector.shape_cast %63 : vector<1x8xf32> to vector<1x8x1xf32>
    %65 = tpu.reciprocal %64 : vector<1x8x1xf32> -> vector<1x8x1xf32>
    %66 = vector.broadcast %65 : vector<1x8x1xf32> to vector<1x8x8xf32>
    %67 = arith.mulf %62, %66 : vector<1x8x8xf32>
    %c2 = arith.constant 2 : index
    %c0_33 = arith.constant 0 : index
    %c0_34 = arith.constant 0 : index
    %c0_35 = arith.constant 0 : index
    %68 = vector.load %arg10[%c2, %c0_33, %c0_34, %c0_35] : memref<4x1x8x8xf32, #tpu.memory_space<vmem>>, vector<1x1x8x8xf32>
    %69 = vector.shape_cast %68 : vector<1x1x8x8xf32> to vector<1x8x8xf32>
    %70 = vector.shape_cast %67 : vector<1x8x8xf32> to vector<1x1x8x8xf32>
    tpu.vector_store %arg10[%c2, %c0_33, %c0_34, %c0_35], %70 {strides = array<i32>} : memref<4x1x8x8xf32, #tpu.memory_space<vmem>>, vector<1x1x8x8xf32>,
    %71 = vector.extract_strided_slice %8 {offsets = [0, 64], sizes = [8, 32], strides = [1, 1]} : vector<8x128xf32> to vector<8x32xf32>
    %72 = vector.shape_cast %71 : vector<8x32xf32> to vector<1x8x32xf32>
    "tpu.trace_start"() <{level = 10 : i32, message = "bqk,bkd->bqd"}> : () -> ()
    %cst_36 = arith.constant dense<0.000000e+00> : vector<1x8x32xf32>
    %73 = tpu.matmul %67, %72, %cst_36 {dimension_numbers = #tpu.dot_dimension_numbers<[2], [1], [1], [2], [0, 0, 0, 1, 1, 2], [0], [0]>} : vector<1x8x8xf32>, vector<1x8x32xf32>, vector<1x8x32xf32> -> vector<1x8x32xf32>
    "tpu.trace_stop"() : () -> ()
    %74 = arith.addf %54, %73 : vector<1x8x32xf32>
    %75 = vector.extract_strided_slice %6 {offsets = [0, 128], sizes = [8, 32], strides = [1, 1]} : vector<8x160xf32> to vector<8x32xf32>
    %76 = vector.shape_cast %75 : vector<8x32xf32> to vector<1x8x32xf32>
    "tpu.trace_start"() <{level = 10 : i32, message = "bqd,bkd->bqk"}> : () -> ()
    %cst_37 = arith.constant dense<0.000000e+00> : vector<1x8x8xf32>
    %77 = tpu.matmul %76, %0, %cst_37 {dimension_numbers = #tpu.dot_dimension_numbers<[2], [2], [1], [1], [0, 0, 0, 1, 1, 1], [0], [0]>} : vector<1x8x32xf32>, vector<1x8x32xf32>, vector<1x8x8xf32> -> vector<1x8x8xf32>
    "tpu.trace_stop"() : () -> ()
    %cst_38 = arith.constant dense<0xFF800000> : vector<1x8xf32>
    %78 = vector.multi_reduction <maximumf>, %77, %cst_38 [2] : vector<1x8x8xf32> to vector<1x8xf32>
    %79 = vector.shape_cast %78 : vector<1x8xf32> to vector<1x8x1xf32>
    %80 = vector.broadcast %79 : vector<1x8x1xf32> to vector<1x8x8xf32>
    %81 = arith.subf %77, %80 : vector<1x8x8xf32>
    %82 = math.exp %81 : vector<1x8x8xf32>
    %cst_39 = arith.constant dense<0.000000e+00> : vector<1x8xf32>
    %83 = vector.multi_reduction <add>, %82, %cst_39 [2] : vector<1x8x8xf32> to vector<1x8xf32>
    %84 = vector.shape_cast %83 : vector<1x8xf32> to vector<1x8x1xf32>
    %85 = tpu.reciprocal %84 : vector<1x8x1xf32> -> vector<1x8x1xf32>
    %86 = vector.broadcast %85 : vector<1x8x1xf32> to vector<1x8x8xf32>
    %87 = arith.mulf %82, %86 : vector<1x8x8xf32>
    %c3 = arith.constant 3 : index
    %c0_40 = arith.constant 0 : index
    %c0_41 = arith.constant 0 : index
    %c0_42 = arith.constant 0 : index
    %88 = vector.load %arg10[%c3, %c0_40, %c0_41, %c0_42] : memref<4x1x8x8xf32, #tpu.memory_space<vmem>>, vector<1x1x8x8xf32>
    %89 = vector.shape_cast %88 : vector<1x1x8x8xf32> to vector<1x8x8xf32>
    %90 = vector.shape_cast %87 : vector<1x8x8xf32> to vector<1x1x8x8xf32>
    tpu.vector_store %arg10[%c3, %c0_40, %c0_41, %c0_42], %90 {strides = array<i32>} : memref<4x1x8x8xf32, #tpu.memory_space<vmem>>, vector<1x1x8x8xf32>,
    %91 = vector.extract_strided_slice %8 {offsets = [0, 96], sizes = [8, 32], strides = [1, 1]} : vector<8x128xf32> to vector<8x32xf32>
    %92 = vector.shape_cast %91 : vector<8x32xf32> to vector<1x8x32xf32>
    "tpu.trace_start"() <{level = 10 : i32, message = "bqk,bkd->bqd"}> : () -> ()
    %cst_43 = arith.constant dense<0.000000e+00> : vector<1x8x32xf32>
    %93 = tpu.matmul %87, %92, %cst_43 {dimension_numbers = #tpu.dot_dimension_numbers<[2], [1], [1], [2], [0, 0, 0, 1, 1, 2], [0], [0]>} : vector<1x8x8xf32>, vector<1x8x32xf32>, vector<1x8x32xf32> -> vector<1x8x32xf32>
    "tpu.trace_stop"() : () -> ()
    %94 = arith.addf %74, %93 : vector<1x8x32xf32>
    %95 = arith.addf %94, %1 : vector<1x8x32xf32>
    %cst_44 = arith.constant dense<0.000000e+00> : vector<1x8xf32>
    %96 = vector.multi_reduction <add>, %95, %cst_44 [2] : vector<1x8x32xf32> to vector<1x8xf32>
    %97 = vector.shape_cast %96 : vector<1x8xf32> to vector<1x8x1xf32>
    %cst_45 = arith.constant 3.125000e-02 : f32
    %98 = vector.broadcast %cst_45 : f32 to vector<1x8x1xf32>
    %99 = arith.mulf %97, %98 : vector<1x8x1xf32>
    %100 = vector.broadcast %99 : vector<1x8x1xf32> to vector<1x8x32xf32>
    %101 = arith.subf %95, %100 : vector<1x8x32xf32>
    %102 = arith.mulf %101, %101 : vector<1x8x32xf32>
    %cst_46 = arith.constant dense<0.000000e+00> : vector<1x8xf32>
    %103 = vector.multi_reduction <add>, %102, %cst_46 [2] : vector<1x8x32xf32> to vector<1x8xf32>
    %104 = vector.shape_cast %103 : vector<1x8xf32> to vector<1x8x1xf32>
    %cst_47 = arith.constant 3.125000e-02 : f32
    %105 = vector.broadcast %cst_47 : f32 to vector<1x8x1xf32>
    %106 = arith.mulf %104, %105 : vector<1x8x1xf32>
    %cst_48 = arith.constant 9.99999974E-6 : f32
    %107 = vector.broadcast %cst_48 : f32 to vector<1x8x1xf32>
    %108 = arith.addf %106, %107 : vector<1x8x1xf32>
    %109 = math.rsqrt %108 : vector<1x8x1xf32>
    %110 = vector.broadcast %109 : vector<1x8x1xf32> to vector<1x8x32xf32>
    %111 = arith.mulf %101, %110 : vector<1x8x32xf32>
    %c0_49 = arith.constant 0 : index
    %c0_50 = arith.constant 0 : index
    %112 = vector.load %arg7[%c0_49, %c0_50] : memref<1x32xf32, #tpu.memory_space<vmem>>, vector<1x32xf32>
    %113 = vector.shape_cast %112 : vector<1x32xf32> to vector<1x1x32xf32>
    %114 = vector.broadcast %113 : vector<1x1x32xf32> to vector<1x8x32xf32>
    %115 = arith.mulf %111, %114 : vector<1x8x32xf32>
    %c0_51 = arith.constant 0 : index
    %c0_52 = arith.constant 0 : index
    %116 = vector.load %arg8[%c0_51, %c0_52] : memref<1x32xf32, #tpu.memory_space<vmem>>, vector<1x32xf32>
    %117 = vector.shape_cast %116 : vector<1x32xf32> to vector<1x1x32xf32>
    %118 = vector.broadcast %117 : vector<1x1x32xf32> to vector<1x8x32xf32>
    %119 = arith.addf %115, %118 : vector<1x8x32xf32>
    %c0_53 = arith.constant 0 : index
    %c0_54 = arith.constant 0 : index
    %c0_55 = arith.constant 0 : index
    %120 = vector.load %arg9[%c0_53, %c0_54, %c0_55] : memref<1x8x32xf32, #tpu.memory_space<vmem>>, vector<1x8x32xf32>
    tpu.vector_store %arg9[%c0_53, %c0_54, %c0_55], %119 {strides = array<i32>} : memref<1x8x32xf32, #tpu.memory_space<vmem>>, vector<1x8x32xf32>,
    return
  }
  func.func @transform_0(%arg0: i32) -> (i32, i32, i32) {
    %c0_i32 = arith.constant 0 : i32
    %c0_i32_0 = arith.constant 0 : i32
    %c0_i32_1 = arith.constant 0 : i32
    return %arg0, %c0_i32, %c0_i32_0 : i32, i32, i32
  }
  func.func @transform_1(%arg0: i32) -> (i32, i32, i32) {
    %c0_i32 = arith.constant 0 : i32
    %c0_i32_0 = arith.constant 0 : i32
    %c0_i32_1 = arith.constant 0 : i32
    return %arg0, %c0_i32, %c0_i32_0 : i32, i32, i32
  }
  func.func @transform_2(%arg0: i32) -> (i32, i32, i32) {
    %c0_i32 = arith.constant 0 : i32
    %c0_i32_0 = arith.constant 0 : i32
    %c0_i32_1 = arith.constant 0 : i32
    return %arg0, %c0_i32, %c0_i32_0 : i32, i32, i32
  }
  func.func @transform_3(%arg0: i32) -> (i32, i32) {
    %c0_i32 = arith.constant 0 : i32
    %c0_i32_0 = arith.constant 0 : i32
    %c0_i32_1 = arith.constant 0 : i32
    return %c0_i32, %c0_i32_0 : i32, i32
  }
  func.func @transform_4(%arg0: i32) -> (i32, i32) {
    %c0_i32 = arith.constant 0 : i32
    %c0_i32_0 = arith.constant 0 : i32
    %c0_i32_1 = arith.constant 0 : i32
    return %c0_i32, %c0_i32_0 : i32, i32
  }
  func.func @transform_5(%arg0: i32) -> (i32, i32) {
    %c0_i32 = arith.constant 0 : i32
    %c0_i32_0 = arith.constant 0 : i32
    %c0_i32_1 = arith.constant 0 : i32
    return %c0_i32, %c0_i32_0 : i32, i32
  }
  func.func @transform_6(%arg0: i32) -> (i32, i32) {
    %c0_i32 = arith.constant 0 : i32
    %c0_i32_0 = arith.constant 0 : i32
    %c0_i32_1 = arith.constant 0 : i32
    return %c0_i32, %c0_i32_0 : i32, i32
  }
  func.func @transform_7(%arg0: i32) -> (i32, i32) {
    %c0_i32 = arith.constant 0 : i32
    %c0_i32_0 = arith.constant 0 : i32
    %c0_i32_1 = arith.constant 0 : i32
    return %c0_i32, %c0_i32_0 : i32, i32
  }
  func.func @transform_8(%arg0: i32) -> (i32, i32, i32) {
    %c0_i32 = arith.constant 0 : i32
    %c0_i32_0 = arith.constant 0 : i32
    %c0_i32_1 = arith.constant 0 : i32
    return %arg0, %c0_i32, %c0_i32_0 : i32, i32, i32
  }
  func.func @transform_9(%arg0: i32) -> (i32, i32, i32, i32) {
    %c0_i32 = arith.constant 0 : i32
    %c0_i32_0 = arith.constant 0 : i32
    %c0_i32_1 = arith.constant 0 : i32
    %c0_i32_2 = arith.constant 0 : i32
    return %c0_i32, %arg0, %c0_i32_0, %c0_i32_1 : i32, i32, i32, i32
  }
}

</mosaic_0001>

<bundles_post_ra>
// kernel: tpu_custom_call.1
= control target key start
LH: loop header
LB: loop body
LE: loop exit
PB: predicated region body
PF: predicated region fallthrough
CT: control target
= control target key end

     0   :  { %s1877_s0 = inlined_call_operand.hbm [shape: f32[2,8,32], index: 0, kind: input, shape index: {}]   ;;  %s1878_s1 = inlined_call_operand.hbm [shape: f32[2,8,32], index: 1, kind: input, shape index: {}]   ;;  %s1879_s2 = inlined_call_operand.hbm [shape: f32[2,8,32], index: 2, kind: input, shape index: {}]   ;;  %s1880_s3 = inlined_call_operand.hbm [shape: f32[32,160], index: 3, kind: input, shape index: {}]   ;;  %s1881_s4 = inlined_call_operand.hbm [shape: f32[32,128], index: 4, kind: input, shape index: {}]   ;;  %s1882_s5 = inlined_call_operand.vmem [shape: f32[1,32], index: 5, kind: input, shape index: {}]   ;;  %s1883_s6 = inlined_call_operand.vmem [shape: f32[1,32], index: 6, kind: input, shape index: {}]   ;;  %s1884_s7 = inlined_call_operand.vmem [shape: f32[1,32], index: 7, kind: input, shape index: {}]   ;;  %s1885_s8 = inlined_call_operand.hbm [shape: f32[2,8,32], index: 8, kind: output, shape index: {0}]   ;;  %s1886_s9 = inlined_call_operand.hbm [shape: f32[4,2,8,8], index: 9, kind: output, shape index: {1}]  }
   0x1   :  { %1895 = sst [smem:[#allocation24_spill]] %s1878_s1 }
   0x2   :  { %1896 = sst [smem:[#allocation25_spill]] %s1880_s3 }
   0x3   :  { %1897 = sst [smem:[#allocation26_spill]] %s1884_s7 }
   0x4   :  { %1898 = sst [smem:[#allocation27_spill]] %s1885_s8 }
   0x5   :  { %15 = vsyncpa [#allocation3], 0 }
   0x6   :  { %17 = vsyncpa [#allocation3 + $0x1], 0 }
   0x7   :  { %18 = vsyncpa [#allocation6], 0 }
   0x8   :  { %20 = vsyncpa [#allocation6 + $0x1], 0 }
   0x9   :  { %21 = vsyncpa [#allocation9], 0 }
   0xa   :  { %22 = vsyncpa [#allocation4], 0 }
   0xb   :  { %24 = vsyncpa [#allocation4 + $0x1], 0 }
   0xc   :  { %25 = vsyncpa [#allocation13], 0 }
   0xd   :  { %27 = vsyncpa [#allocation13 + $0x1], 0  ;;  %s1577_s30 = smov 0   ;;  %s1579_s10 = smov 0  }
   0xe   :  { %s1581_s11 = smov 0   ;;  %s1583_s12 = smov 0  }
   0xf LB: > { %1899 = sst [smem:[#allocation19_spill]] %s1501_s30  ;;  %s1601_s16 = sadd.s32 4294967295, %s1513_s12   ;;  %s1513_s12 = sphi %s1583_s12, %s1921_s12   ;;  %s1509_s11 = sphi %s1581_s11, %s1925_s11   ;;  %s1505_s10 = sphi %s1579_s10, %s1924_s10   ;;  %s1501_s30 = sphi %s1577_s30, %s1923_s30  }
  0x10   : > { %1900 = sst [smem:[#allocation20_spill]] %s1513_s12  ;;  %p1102_p0 = scmp.ge.s32.totalorder %s1513_s12, 1 }
  0x11   : > { %s1901_s3 = sld [smem:[#allocation25_spill]]  ;;  %p1894_p1 = scmp.eq.s32.totalorder %s1601_s16, 0 }
  0x12   : > { %p273_p2 = scmp.lt.s32.totalorder %s1513_s12, 3  ;;  %s1515_s18 = smov [#allocation8]  }
  0x13   : > { %s286_s19 = sshll.u32 %s1515_s18, 4  ;;  %s1516_s21 = smov 256   ;;  %s287_s19 = int_to_ptr.vmem [resolvable:$true] %s286_s19 }
  0x14   : > { %p1606_p3 = pnand %p1102_p0, %p273_p2  ;;  %s1517_s22 = smov 16  }
  0x15   : > { %s1101_s23 = sadd.s32 4294967294, %s1513_s12   ;;  %s1623_s24 = sadd.s32 1, %s1513_s12  }
  0x16   : > { %p1162_p4 = pneg %p1606_p3  ;;  %1904 = sst [smem:[#allocation21_spill]] %s1623_s24 }
  0x17   : > { %s284_s15 = sshll.u32 %s1901_s3, 4  ;;  %s40_s25 = sadd.s32 1, %s1509_s11  ;;  %s285_s15 = int_to_ptr.hbm [resolvable:$true] %s284_s15 }
  0x18   : > { %p1615_p6 = pnand %p1162_p4, %p1894_p1  ;;  %s37_s26 = ssub.s32 %s1513_s12, %s1623_s24 }
  0x19   : > { %p47_p7 = scmp.ne.s32.totalorder %s1509_s11, %s1505_s10  ;;  %p38_p8 = scmp.eq.s32.totalorder %s37_s26, 0 }
  0x1a   : > { %1165 = dma.hbm_to_vmem [thread:$0]  (!%p1615_p6), %s285_s15, 1024, %s287_s19, [#allocation9], %s1516_s21, %s1516_s21, %s1517_s22  }
  0x1b   : > { %p48_p9 = scmp.eq.s32.totalorder %s1513_s12, 0  ;;  %p53_p10 = scmp.ne.s32.totalorder %s1505_s10, %s1501_s30 }
  0x1c   : > { %p234_p11 = scmp.eq.s32.totalorder %s1601_s16, 1  ;;  %p240_p2 = scmp.eq.s32.totalorder %s1101_s23, 1 }
  0x1d   : > { %s1635_s27 = scalar_select %p38_p8, %s1509_s11, %s40_s25  }
  0x1e   : > { %p49_p12 = por %p48_p9, %p47_p7  ;;  %p1639_p13 = por %p1894_p1, %p53_p10 }
  0x1f   : > { %1905 = sst [smem:[#allocation22_spill]] %s1635_s27  ;;  %p1643_p0 = por %p234_p11, %p47_p7 }
  0x20   : > { %p1188_p4 = scmp.lt.s32.totalorder %s1513_s12, 2  ;;  %s1887_s13 = sand.u32 1, %s1509_s11  }
  0x21   : > { %p1649_p5 = por %p240_p2, %p53_p10  ;;  %s1655_s15 = sshll.u32 %s1887_s13, 3 }
  0x22   : > { %s1658_s18 = sshll.u32 %s1513_s12, 3  ;;  %p1660_p8 = pnand %p1188_p4, %p49_p12 }
  0x23   : > { %s1908_s14 = scalar_select %p1649_p5, 1, 0 }
  0x24   : > { %s342_s21 = sand.u32 1, %s1513_s12   ;;  %s1911_s1 = sld [smem:[#allocation24_spill]] }
  0x25   : > { %1909 = sst [smem:[#allocation23_spill]] %s1908_s14  ;;  %s346_s26 = scalar_lea.vmem [#allocation5], %s1655_s15 }
  0x26   : > { %s354_s3 = sshll.u32 %s346_s26, 4  ;;  %s298_s14 = sshll.u32 %s1881_s4, 4  ;;  %s355_s3 = int_to_ptr.vmem [resolvable:$true] %s354_s3  ;;  %s299_s14 = int_to_ptr.hbm [resolvable:$true] %s298_s14 }
  0x27   : > { %s1673_s30 = scalar_lea.sflag [#allocation6], %s342_s21  ;;  %p1291_p9 = pneg %p1660_p8 }
  0x2a   : > { %s350_s25 = scalar_lea.hbm %s1911_s1, %s1658_s18 }
  0x2b   : > { %s352_s27 = sshll.u32 %s350_s25, 4  ;;  %s1294_s25 = scalar_lea.hbm %s1911_s1, 16  ;;  %s353_s27 = int_to_ptr.hbm [resolvable:$true] %s352_s27 }
  0x2c   : > { %s1287_s7 = sshra.s32 %s353_s27, 4  ;;  %s1288_s7 = int_to_ptr.hbm [resolvable:$true] %s1287_s7 }
  0x2d   : > { %s1289_s8 = scalar_lea.hbm %s1288_s7, 8  ;;  %p1295_p12 = scmp.lt.s32.totalorder %s1288_s7, %s1911_s1 }
  0x2e   : > { %p1290_p7 = scmp.ne.s32.totalorder %s1288_s7, %s1289_s8  ;;  %p1296_p2 = scmp.lt.s32.totalorder %s1294_s25, %s1289_s8 }
  0x30   : > { %p1292_p10 = pnand %p1291_p9, %p1290_p7  ;;  %p1297_p4 = por %p1296_p2, %p1295_p12 }
  0x32   : > { %p1293_p11 = pneg %p1292_p10 }
  0x34   : > { %p1298_p1 = pnand %p1297_p4, %p1293_p11 }
  0x36   : > { %1301 = shalt.err (!%p1298_p1)
}
  0x37   : > { %1175 = dma.hbm_to_vmem [thread:$0]  (!%p1660_p8), %s353_s27, 128, %s355_s3, %s1673_s30  }
  0x38   : > { %s1518_s24 = smov [#allocation10]   ;;  %s1519_s21 = smov 128  }
  0x39   : > { %s300_s13 = sshll.u32 %s1518_s24, 4  ;;  %s1520_s12 = smov 8   ;;  %s301_s13 = int_to_ptr.vmem [resolvable:$true] %s300_s13 }
  0x3a   : > { %1168 = dma.hbm_to_vmem [thread:$0]  (!%p1615_p6), %s299_s14, 512, %s301_s13, [#allocation9], %s1519_s21, %s1519_s21, %s1520_s12  }
  0x3b   : > { %s331_s22 = scalar_lea.hbm %s1877_s0, %s1658_s18  ;;  %s327_s23 = scalar_lea.vmem [#allocation2], %s1655_s15 }
  0x3c   : > { %s335_s25 = sshll.u32 %s327_s23, 4  ;;  %s333_s26 = sshll.u32 %s331_s22, 4  ;;  %s336_s25 = int_to_ptr.vmem [resolvable:$true] %s335_s25  ;;  %s334_s26 = int_to_ptr.hbm [resolvable:$true] %s333_s26 }
  0x3d   : > { %s1912_s1 = sand.u32 1, %s1509_s11   ;;  %s1347_s27 = sshra.s32 %s334_s26, 4  ;;  %s1348_s27 = int_to_ptr.hbm [resolvable:$true] %s1347_s27 }
  0x3e   : > { %s324_s3 = scalar_lea.sflag [#allocation3], %s1912_s1  ;;  %s1349_s24 = scalar_lea.hbm %s1348_s27, 8 }
  0x3f   : > { %p1350_p1 = scmp.ne.s32.totalorder %s1348_s27, %s1349_s24  ;;  %s1354_s13 = scalar_lea.hbm %s1877_s0, 16 }
  0x40   : > { %p1355_p6 = scmp.lt.s32.totalorder %s1348_s27, %s1877_s0  ;;  %p1356_p11 = scmp.lt.s32.totalorder %s1354_s13, %s1349_s24 }
  0x41   : > { %p1352_p7 = pnand %p1350_p1, %p1291_p9 }
  0x42   : > { %p1357_p12 = por %p1356_p11, %p1355_p6 }
  0x43   : > { %p1353_p10 = pneg %p1352_p7 }
  0x45   : > { %p1358_p2 = pnand %p1357_p12, %p1353_p10 }
  0x47   : > { %1361 = shalt.err (!%p1358_p2)
}
  0x48   : > { %1172 = dma.hbm_to_vmem [thread:$0]  (!%p1660_p8), %s334_s26, 128, %s336_s25, %s324_s3  }
  0x49   : > { %s369_s8 = scalar_lea.hbm %s1879_s2, %s1658_s18  ;;  %s365_s22 = scalar_lea.vmem [#allocation7], %s1655_s15 }
  0x4a   : > { %s373_s23 = sshll.u32 %s365_s22, 4  ;;  %s371_s20 = sshll.u32 %s369_s8, 4  ;;  %s374_s23 = int_to_ptr.vmem [resolvable:$true] %s373_s23  ;;  %s372_s20 = int_to_ptr.hbm [resolvable:$true] %s371_s20 }
  0x4b   : > { %s1377_s27 = sshra.s32 %s372_s20, 4  ;;  %s1384_s25 = scalar_lea.hbm %s1879_s2, 16  ;;  %s1378_s27 = int_to_ptr.hbm [resolvable:$true] %s1377_s27 }
  0x4c   : > { %s1379_s24 = scalar_lea.hbm %s1378_s27, 8  ;;  %p1385_p10 = scmp.lt.s32.totalorder %s1378_s27, %s1879_s2 }
  0x4d   : > { %p1380_p4 = scmp.ne.s32.totalorder %s1378_s27, %s1379_s24  ;;  %p1386_p6 = scmp.lt.s32.totalorder %s1384_s25, %s1379_s24 }
  0x4f   : > { %p1382_p1 = pnand %p1380_p4, %p1291_p9  ;;  %p1387_p11 = por %p1386_p6, %p1385_p10 }
  0x51   : > { %p1383_p7 = pneg %p1382_p1 }
  0x53   : > { %p1388_p12 = pnand %p1387_p11, %p1383_p7 }
  0x55   : > { %1391 = shalt.err (!%p1388_p12)
}
  0x56   : > { %1178 = dma.hbm_to_vmem [thread:$0]  (!%p1660_p8), %s372_s20, 128, %s374_s23, %s1673_s30  }
  0x57   : > { %382 = sbr.rel (%p1606_p3) target bundleno = 1163 (0x48b), region = 52  ;;  %s1729_s15 = sand.u32 (!%p1606_p3), 1, %s1505_s10  }
  0x58   : > { %s1732_s18 = sshll.u32 (!%p1606_p3), %s1729_s15, 3  ;;  %s385_s21 = scalar_lea.sflag (!%p1606_p3), [#allocation3], %s1729_s15 }
  0x59   : > { %s388_s12 = scalar_lea.vmem (!%p1606_p3), [#allocation2], %s1732_s18 }
  0x5c   : > { %1480 = dma.done.wait (%p1639_p13), %s385_s21, 128  }
  0x5d   : > { %1482 = vsyncadd (%p1639_p13), %s385_s21, 4294967168  ;;  %s394_s30 = sand.u32 1, %s1601_s16   ;;  %s398_s19 = scalar_lea.vmem [#allocation5], %s1732_s18 }
  0x5e   : > { %s395_s17 = scalar_lea.sflag [#allocation6], %s394_s30 }
  0x5f   : > { %1484 = dma.done.wait (%p1639_p13), %s395_s17, 256  }
  0x60   : > { %1486 = vsyncadd (%p1639_p13), %s395_s17, 4294967040  ;;  %s408_s1 = scalar_lea.vmem [#allocation7], %s1732_s18  ;;  %p1913_p3 = scmp.eq.s32.totalorder %s1601_s16, 0 }
  0x62   : > { %1488 = dma.done.wait (%p1913_p3), [#allocation9], 1536   ;;  %p1914_p8 = pmov %p1913_p3 }
  0x63   : > { %v478_v0 = vld [vmem:[#allocation8 + $0x30] sm:$0xff]  ;;  %v476_v1 = vld [vmem:[#allocation8 + $0x20] sm:$0xff]  ;;  %v479_v2 = vld [vmem:[#allocation8 + $0x38] sm:$0xff]  ;;  %vm480_vm0 = vcmask 261120   ;;  %s1521_s28 = smov 64   ;;  %s1522_s7 = smov 96  }
  0x64   : > { %1490 = vsyncadd (%p1914_p8), [#allocation9], 4294965760  ;;  %496 = vmatpush.msra.mxu0 %v478_v0  ;;  %v474_v3 = vld [vmem:[#allocation8 + $0x10] sm:$0xff]  ;;  %516 = vmatpush.msra.mxu1 %v479_v2  ;;  %v477_v4 = vld [vmem:[#allocation8 + $0x28] sm:$0xff]  ;;  %s1523_s8 = smov 32   ;;  %vm584_vm1 = vcmask 64512  }
  0x65   : > { %v475_v5 = vld [vmem:[#allocation8 + $0x18] sm:$0xff]  ;;  %v472_v6 = vld [vmem:[#allocation8] sm:$0xff]  ;;  %v473_v8 = vld [vmem:[#allocation8 + $0x8] sm:$0xff]  ;;  %s1119_s22 = sshll.u32 %s1729_s15, 5  ;;  %s1140_s14 = sshll.u32 %s1601_s16, 3 }
  0x66   : > { %497 = vmatpush.msra.mxu0 %v476_v1  ;;  %517 = vmatpush.msra.mxu1 %v477_v4  ;;  %v1751_v7 = vld [vmem:[%s408_s1] sm:$0xff]  ;;  %v525_v12 = vld [vmem:[#allocation10 + $0x8] sm:$0xff]  ;;  %v524_v13 = vld [vmem:[#allocation10] sm:$0xff]  ;;  %s1794_s23 = scalar_lea.vmem [#allocation12], %s1119_s22  ;;  %s929_s26 = scalar_lea.hbm %s1886_s9, %s1140_s14 }
  0x67   : > { %v527_v9 = vld [vmem:[#allocation10 + $0x18] sm:$0xff]  ;;  %v526_v10 = vld [vmem:[#allocation10 + $0x10] sm:$0xff]  ;;  %v471_v15 = vld [vmem:[%s398_s19] sm:$0xff]  ;;  %s930_s24 = sshll.u32 %s1794_s23, 4  ;;  %s932_s3 = sshll.u32 %s929_s26, 4  ;;  %s931_s24 = int_to_ptr.vmem [resolvable:$true] %s930_s24  ;;  %s933_s3 = int_to_ptr.hbm [resolvable:$true] %s932_s3 }
  0x68   : > { %498 = vmatpush.msra.mxu0 %v474_v3  ;;  %518 = vmatpush.msra.mxu1 %v475_v5  ;;  %v469_v11 = vld [vmem:[%s388_s12] sm:$0xff]  ;;  %s905_s21 = scalar_lea.sflag [#allocation13], %s1729_s15  ;;  %s1421_s12 = sshra.s32 %s933_s3, 4  ;;  %s1422_s12 = int_to_ptr.hbm [resolvable:$true] %s1421_s12 }
  0x69   : > { %543 = vmatpush.msra.mxu2 %v527_v9  ;;  %1123 = vmatpush.xpose.msk.msra.mxu3 %vm480_vm0, %v469_v11  ;;  %s1423_s30 = scalar_lea.hbm %s1422_s12, 32  ;;  %s1427_s1 = scalar_lea.hbm %s1886_s9, 64 }
  0x6a   : > { %499 = vmatpush.msra.mxu0 %v472_v6  ;;  %519 = vmatpush.msra.mxu1 %v473_v8  ;;  %p1424_p13 = scmp.ne.s32.totalorder %s1422_s12, %s1423_s30  ;;  %p1428_p4 = scmp.lt.s32.totalorder %s1422_s12, %s1886_s9 }
  0x6b   : > { %1120 = vmatmul.msk.f32.vlgmr.msra.gmra.mxu0 %vm480_vm0, %v1751_v7  ;;  %1121 = vmatmul.msk.f32.vlgmr.msra.gmra.mxu1 %vm480_vm0, %v1751_v7  ;;  %p1429_p1 = scmp.lt.s32.totalorder %s1427_s1, %s1423_s30 }
  0x6c   : > { %1126 = vmatpush.xpose.msk.msrb.mxu0 %vm480_vm0, %v469_v11  ;;  %544 = vmatpush.msra.mxu2 %v526_v10  ;;  %p1425_p9 = pnand %p1424_p13, %p1643_p0 }
  0x6d   : > { %p1430_p7 = por %p1429_p1, %p1428_p4 }
  0x6e   : > { %545 = vmatpush.msra.mxu2 %v525_v12  ;;  %p1426_p2 = pneg %p1425_p9 }
  0x70   : > { %1134 = vmatpush.xpose.msk.msra.mxu0 %vm480_vm0, %v469_v11  ;;  %546 = vmatpush.msra.mxu2 %v524_v13  ;;  %p1431_p10 = pnand %p1430_p7, %p1426_p2 }
  0x71   : > { %1122 = vmatmul.msk.f32.vlgmr.msra.gmra.mxu2 %vm480_vm0, %v471_v15 }
  0x72   : > { %1130 = vmatpush.xpose.msk.msrb.mxu2 %vm480_vm0, %v469_v11 }
  0xe8   : > { %v1763_v14 = vpop.f32.mrf.mxu0  ;;  %v521_v18 = vpop.f32.mrf.mxu1 }
  0xe9   : > { %634 = vrot.lane.b32.xlu1 %v1763_v14, %s1521_s28  ;;  %557 = vrot.lane.b32.xlu0 %v1763_v14, %s1522_s7 }
  0xf1   : > { %712 = vrot.lane.b32.xlu0 %v1763_v14, %s1523_s8 }
  0xf4   : > { %v548_v20 = vpop.f32.mrf.mxu2 }
  0xf5   : > { %628 = vmatpush.msrb.mxu3 %v548_v20 }
 0x15b   : > { %v635_v16 = vpop.permute.xlu1 %634  ;;  %v558_v17 = vpop.permute.xlu0 %557 }
 0x15c   : > { %1124 = vmatmul.msk.f32.vlgmr.msra.gmra.mxu3 %vm480_vm0, %v558_v17  ;;  %1127 = vmatmul.msk.f32.vlgmr.msrb.gmra.mxu0 %vm480_vm0, %v635_v16 }
 0x163   : > { %v713_v19 = vpop.permute.xlu0 %712 }
 0x164   : > { %1131 = vmatmul.msk.f32.vlgmr.msrb.gmra.mxu2 %vm480_vm0, %v713_v19  ;;  %1135 = vmatmul.msk.f32.vlgmr.msra.gmra.mxu0 %vm480_vm0, %v521_v18 }
 0x1d9   : > { %v655_v21 = vpop.f32.mrf.mxu0 }
 0x1da   : > { %v658_v22 = vsel %vm584_vm1, %v655_v21, -inf }
 0x1db   : > { %659 = vmax.xlane.f32.xlu2 %v658_v22 }
 0x1df   : > { %v581_v23 = vpop.f32.mrf.mxu3 }
 0x1e0   : > { %v585_v24 = vsel %vm584_vm1, %v581_v23, -inf }
 0x1e1   : > { %v809_v25 = vpop.f32.mrf.mxu0  ;;  %586 = vmax.xlane.f32.xlu1 %v585_v24 }
 0x1e2   : > { %v812_v26 = vsel %vm584_vm1, %v809_v25, -inf }
 0x1e3   : > { %813 = vmax.xlane.f32.xlu0 %v812_v26 }
 0x1e7   : > { %v733_v27 = vpop.f32.mrf.mxu2 }
 0x1e8   : > { %v736_v28 = vsel %vm584_vm1, %v733_v27, -inf }
 0x1e9   : > { %737 = vmax.xlane.f32.xlu2 %v736_v28 }
 0x1f7   : > { %838 = vrot.lane.b32.xlu0 %v548_v20, %s1523_s8 }
 0x1fa   : > { %762 = vrot.lane.b32.xlu1 %v548_v20, %s1521_s28 }
 0x24e   : > { %v660_v29 = vpop.xlane.xlu2 %659 }
 0x24f   : > { %v661_v30 = vsub.f32 %v655_v21, %v660_v29 }
 0x251   : > { %v662_v31 = vmul.f32 1.442695, %v661_v30 }
 0x253   : > { %1239 = vpow2.f32 %v662_v31 }
 0x254   : > { %v587_v32 = vpop.xlane.xlu1 %586 }
 0x255   : > { %v588_v33 = vsub.f32 %v581_v23, %v587_v32 }
 0x256   : > { %v814_v39 = vpop.xlane.xlu0 %813 }
 0x257   : > { %v589_v34 = vmul.f32 1.442695, %v588_v33  ;;  %v815_v42 = vsub.f32 %v809_v25, %v814_v39 }
 0x259   : > { %v1240_v35 = vpop.eup %1239  ;;  %1241 = vpow2.f32 %v589_v34  ;;  %v816_v44 = vmul.f32 1.442695, %v815_v42 }
 0x25a   : > { %v664_v36 = vsel %vm584_vm1, %v1240_v35, 0.0 }
 0x25b   : > { %665 = vadd.xlane.f32.xlu2 %v664_v36 }
 0x25c   : > { %v738_v37 = vpop.xlane.xlu2 %737 }
 0x25d   : > { %v739_v38 = vsub.f32 %v733_v27, %v738_v37 }
 0x25f   : > { %v1242_v40 = vpop.eup %1241  ;;  %v740_v41 = vmul.f32 1.442695, %v739_v38  ;;  %v1236_v38 = vld [vmem:[%s1882_s5] ss:$0 sm:$0xff] }
 0x260   : > { %v591_v43 = vsel %vm584_vm1, %v1242_v40, 0.0 }
 0x261   : > { %1243 = vpow2.f32 %v740_v41 }
 0x262   : > { %1245 = vpow2.f32 %v816_v44 }
 0x263   : > { %592 = vadd.xlane.f32.xlu2 %v591_v43 }
 0x267   : > { %v1784_v45 = vpop.eup %1243 }
 0x268   : > { %v742_v46 = vsel %vm584_vm1, %v1784_v45, 0.0  ;;  %v1788_v48 = vpop.eup %1245 }
 0x269   : > { %v818_v49 = vsel %vm584_vm1, %v1788_v48, 0.0  ;;  %v839_v27 = vpop.permute.xlu0 %838 }
 0x26b   : > { %743 = vadd.xlane.f32.xlu2 %v742_v46 }
 0x26c   : > { %v763_v47 = vpop.permute.xlu1 %762 }
 0x26d   : > { %783 = vmatpush.msra.mxu3 %v763_v47 }
 0x273   : > { %819 = vadd.xlane.f32.xlu2 %v818_v49 }
 0x28b   : > { %685 = vrot.lane.b32.xlu2 %v548_v20, %s1522_s7 }
 0x2ce   : > { %v666_v50 = vpop.xlane.xlu2 %665 }
 0x2cf   : > { %1247 = vrcp.f32 %v666_v50  ;;  %v678_v56 = vand.u32 2147483648, %v666_v50  ;;  %v676_v57 = vand.u32 2147483647, %v666_v50  ;;  %vm672_vm3 = vweird.f32 %v666_v50 }
 0x2d1   : > { %v679_v60 = vor.u32 1.1754944e-38, %v678_v56  ;;  %vm677_vm5 = vcmp.eq.f32.partialorder %v676_v57, 8.507059e+37 }
 0x2d5   : > { %v1248_v51 = vpop.eup %1247 }
 0x2d6   : > { %v668_v52 = vmul.f32 %v1248_v51, %v666_v50  ;;  %v593_v53 = vpop.xlane.xlu2 %592  ;;  %vm673_vm2 = vweird.f32 %v1248_v51 }
 0x2d7   : > { %1249 = vrcp.f32 %v593_v53  ;;  %vm674_vm4 = vmor %vm672_vm3, %vm673_vm2  ;;  %v605_v4 = vand.u32 2147483648, %v593_v53  ;;  %v603_v5 = vand.u32 2147483647, %v593_v53  ;;  %vm599_vm7 = vweird.f32 %v593_v53 }
 0x2d8   : > { %v669_v54 = vsub.f32 1.0, %v668_v52 }
 0x2d9   : > { %v606_v9 = vor.u32 1.1754944e-38, %v605_v4  ;;  %vm604_vm9 = vcmp.eq.f32.partialorder %v603_v5, 8.507059e+37 }
 0x2da   : > { %v670_v55 = vmul.f32 %v1248_v51, %v669_v54 }
 0x2dc   : > { %v671_v58 = vadd.f32 %v1248_v51, %v670_v55 }
 0x2dd   : > { %v1250_v59 = vpop.eup %1249 }
 0x2de   : > { %v595_v61 = vmul.f32 %v1250_v59, %v593_v53  ;;  %v744_v62 = vpop.xlane.xlu2 %743  ;;  %v675_v63 = vsel %vm674_vm4, %v1248_v51, %v671_v58  ;;  %vm600_vm6 = vweird.f32 %v1250_v59 }
 0x2df   : > { %1251 = vrcp.f32 %v744_v62  ;;  %v680_v1 = vsel %vm677_vm5, %v679_v60, %v675_v63  ;;  %vm601_vm8 = vmor %vm599_vm7, %vm600_vm6  ;;  %v756_v16 = vand.u32 2147483648, %v744_v62  ;;  %v754_v19 = vand.u32 2147483647, %v744_v62 }
 0x2e0   : > { %v596_v0 = vsub.f32 1.0, %v595_v61  ;;  %v681_v2 = vmul.f32 %v1240_v35, %v680_v1  ;;  %vm750_vm11 = vweird.f32 %v744_v62 }
 0x2e1   : > { %v757_v22 = vor.u32 1.1754944e-38, %v756_v16  ;;  %vm755_vm13 = vcmp.eq.f32.partialorder %v754_v19, 8.507059e+37 }
 0x2e2   : > { %v597_v3 = vmul.f32 %v1250_v59, %v596_v0  ;;  %1128 = vst.msk [vmem:[%s1794_s23 + $0x8] sm:$0xff] %vm584_vm1, %v681_v2 }
 0x2e4   : > { %v598_v6 = vadd.f32 %v1250_v59, %v597_v3 }
 0x2e5   : > { %v1252_v8 = vpop.eup %1251 }
 0x2e6   : > { %v746_v10 = vmul.f32 %v1252_v8, %v744_v62  ;;  %v820_v11 = vpop.xlane.xlu2 %819  ;;  %v602_v12 = vsel %vm601_vm8, %v1250_v59, %v598_v6  ;;  %vm751_vm10 = vweird.f32 %v1252_v8 }
 0x2e7   : > { %1253 = vrcp.f32 %v820_v11  ;;  %v607_v15 = vsel %vm604_vm9, %v606_v9, %v602_v12  ;;  %vm752_vm12 = vmor %vm750_vm11, %vm751_vm10  ;;  %v832_v30 = vand.u32 2147483648, %v820_v11  ;;  %v830_v32 = vand.u32 2147483647, %v820_v11 }
 0x2e8   : > { %v747_v13 = vsub.f32 1.0, %v746_v10  ;;  %v608_v17 = vmul.f32 %v1242_v40, %v607_v15  ;;  %vm826_vm15 = vweird.f32 %v820_v11  ;;  %v555_v40 = vadd.f32 %v1236_v38, %v1763_v14 }
 0x2e9   : > { %v833_v34 = vor.u32 1.1754944e-38, %v832_v30  ;;  %vm831_vm3 = vcmp.eq.f32.partialorder %v830_v32, 8.507059e+37 }
 0x2ea   : > { %v748_v18 = vmul.f32 %v1252_v8, %v747_v13  ;;  %609 = vst.msk [vmem:[%s1794_s23] sm:$0xff] %vm584_vm1, %v608_v17  ;;  %1125 = vmatmul.msk.f32.vlgmr.msrb.gmra.mxu3 %vm584_vm1, %v608_v17 }
 0x2ec   : > { %v749_v20 = vadd.f32 %v1252_v8, %v748_v18 }
 0x2ed   : > { %v1254_v21 = vpop.eup %1253 }
 0x2ee   : > { %v753_v23 = vsel %vm752_vm12, %v1252_v8, %v749_v20  ;;  %v822_v24 = vmul.f32 %v1254_v21, %v820_v11  ;;  %v686_v25 = vpop.permute.xlu2 %685  ;;  %vm827_vm14 = vweird.f32 %v1254_v21 }
 0x2ef   : > { %v758_v26 = vsel %vm755_vm13, %v757_v22, %v753_v23  ;;  %706 = vmatpush.msrb.mxu1 %v686_v25  ;;  %vm828_vm2 = vmor %vm826_vm15, %vm827_vm14 }
 0x2f0   : > { %v823_v28 = vsub.f32 1.0, %v822_v24  ;;  %1129 = vmatmul.msk.f32.vlgmr.msrb.gmra.mxu1 %vm584_vm1, %v681_v2  ;;  %v759_v29 = vmul.f32 %v1784_v45, %v758_v26 }
 0x2f1   : > { %859 = vmatpush.msra.mxu1 %v839_v27 }
 0x2f2   : > { %v824_v31 = vmul.f32 %v1254_v21, %v823_v28  ;;  %1132 = vst.msk [vmem:[%s1794_s23 + $0x10] sm:$0xff] %vm584_vm1, %v759_v29  ;;  %1133 = vmatmul.msk.f32.vlgmr.msra.gmra.mxu3 %vm584_vm1, %v759_v29 }
 0x2f4   : > { %v825_v33 = vadd.f32 %v1254_v21, %v824_v31 }
 0x2f6   : > { %v829_v35 = vsel %vm828_vm2, %v1254_v21, %v825_v33 }
 0x2f7   : > { %v834_v36 = vsel %vm831_vm3, %v833_v34, %v829_v35 }
 0x2f8   : > { %v835_v37 = vmul.f32 %v1788_v48, %v834_v36 }
 0x2fa   : > { %1136 = vst.msk [vmem:[%s1794_s23 + $0x18] sm:$0xff] %vm584_vm1, %v835_v37  ;;  %1137 = vmatmul.msk.f32.vlgmr.msra.gmra.mxu1 %vm584_vm1, %v835_v37 }
 0x36d   : > { %v630_v39 = vpop.f32.mrf.mxu3  ;;  %v708_v41 = vpop.f32.mrf.mxu1 }
 0x36e   : > { %v633_v42 = vadd.f32 %v630_v39, %v555_v40 }
 0x370   : > { %v711_v43 = vadd.f32 %v708_v41, %v633_v42 }
 0x375   : > { %v785_v44 = vpop.f32.mrf.mxu3 }
 0x376   : > { %v788_v45 = vadd.f32 %v785_v44, %v711_v43 }
 0x377   : > { %v861_v46 = vpop.f32.mrf.mxu1 }
 0x378   : > { %v864_v47 = vadd.f32 %v861_v46, %v788_v45 }
 0x37a   : > { %v865_v48 = vadd.f32 %v864_v47, %v1751_v7 }
 0x37c   : > { %v866_v49 = vsel %vm480_vm0, %v865_v48, 0.0 }
 0x37d   : > { %867 = vadd.xlane.f32.xlu2 %v866_v49 }
 0x3f0   : > { %v868_v50 = vpop.xlane.xlu2 %867 }
 0x3f1   : > { %v869_v51 = vmul.f32 0.03125, %v868_v50 }
 0x3f3   : > { %v870_v14 = vsub.f32 %v865_v48, %v869_v51 }
 0x3f5   : > { %v871_v52 = vmul.f32 %v870_v14, %v870_v14 }
 0x3f7   : > { %v872_v53 = vsel %vm480_vm0, %v871_v52, 0.0 }
 0x3f8   : > { %873 = vadd.xlane.f32.xlu1 %v872_v53 }
 0x3f9   : > { %1434 = shalt.err (!%p1431_p10)
}
 0x3fa   : > { %s1524_s8 = smov 128   ;;  %s1525_s22 = smov 256   ;;  %v1237_v62 = vld [vmem:[%s1883_s6] ss:$0 sm:$0xff] }
 0x3fb   : > { %s1526_s23 = smov 8   ;;  %s1915_s25 = sld [smem:[#allocation27_spill]] }
 0x3fc   : > { %1159 = dma.vmem_to_hbm [thread:$0]  (%p1643_p0), %s931_s24, 512, %s933_s3, %s905_s21, %s1524_s8, %s1525_s22, %s1526_s23  }
 0x3fd   : > { %s1916_s12 = sld [smem:[#allocation26_spill]]  ;;  %s461_s30 = scalar_lea.vmem [#allocation11], %s1732_s18 }
 0x3fe   : > { %s917_s17 = sshll.u32 %s461_s30, 4  ;;  %s900_s16 = scalar_lea.sflag [#allocation4], %s1729_s15  ;;  %s918_s17 = int_to_ptr.vmem [resolvable:$true] %s917_s17 }
 0x401   : > { %s915_s26 = scalar_lea.hbm %s1915_s25, %s1140_s14  ;;  %s1455_s18 = scalar_lea.hbm %s1915_s25, 16 }
 0x402   : > { %s919_s19 = sshll.u32 %s915_s26, 4  ;;  %s920_s19 = int_to_ptr.hbm [resolvable:$true] %s919_s19 }
 0x403   : > { %v1238_v0 = vld [vmem:[%s1916_s12] ss:$0 sm:$0xff]  ;;  %s1449_s1 = sshra.s32 %s920_s19, 4  ;;  %s1450_s1 = int_to_ptr.hbm [resolvable:$true] %s1449_s1 }
 0x404   : > { %s1451_s14 = scalar_lea.hbm %s1450_s1, 8  ;;  %p1456_p3 = scmp.lt.s32.totalorder %s1450_s1, %s1915_s25 }
 0x405   : > { %p1452_p6 = scmp.ne.s32.totalorder %s1450_s1, %s1451_s14  ;;  %p1457_p8 = scmp.lt.s32.totalorder %s1455_s18, %s1451_s14 }
 0x407   : > { %p1453_p11 = pnand %p1452_p6, %p1643_p0  ;;  %p1458_p13 = por %p1457_p8, %p1456_p3 }
 0x409   : > { %p1454_p12 = pneg %p1453_p11 }
 0x40b   : > { %p1459_p9 = pnand %p1458_p13, %p1454_p12 }
 0x46b   : > { %v874_v7 = vpop.xlane.xlu1 %873 }
 0x46c   : > { %v875_v54 = vmul.f32 0.03125, %v874_v7 }
 0x46e   : > { %v876_v55 = vadd.f32 1e-05, %v875_v54 }
 0x470   : > { %1255 = vrsqrt.f32 %v876_v55  ;;  %vm883_vm4 = vweird.f32 %v876_v55 }
 0x476   : > { %v1256_v56 = vpop.eup %1255 }
 0x477   : > { %v878_v57 = vmul.f32 %v1256_v56, %v876_v55  ;;  %vm884_vm1 = vweird.f32 %v1256_v56 }
 0x478   : > { %vm885_vm5 = vmor %vm883_vm4, %vm884_vm1 }
 0x479   : > { %v879_v58 = vmul.f32 %v1256_v56, %v878_v57 }
 0x47b   : > { %v880_v59 = vmul.f32 0.5, %v879_v58 }
 0x47d   : > { %v881_v60 = vsub.f32 1.5, %v880_v59 }
 0x47f   : > { %v882_v61 = vmul.f32 %v1256_v56, %v881_v60 }
 0x481   : > { %v886_v63 = vsel %vm885_vm5, %v1256_v56, %v882_v61 }
 0x482   : > { %v887_v1 = vmul.f32 %v886_v63, %v870_v14 }
 0x484   : > { %v892_v2 = vmul.f32 %v1237_v62, %v887_v1 }
 0x486   : > { %v897_v3 = vadd.f32 %v1238_v0, %v892_v2 }
 0x488   : > { %898 = vst.msk [vmem:[%s461_s30] sm:$0xff] %vm480_vm0, %v897_v3 }
 0x489   : > { %1462 = shalt.err (!%p1459_p9)
}
 0x48a   : > { %1158 = dma.vmem_to_hbm [thread:$0]  (%p1643_p0), %s918_s17, 128, %s920_s19, %s900_s16  }
 0x48b PF: > { %s1917_s15 = sld [smem:[#allocation19_spill]] }
 0x48c   : > { %s1919_s20 = sld [smem:[#allocation20_spill]] }
 0x491   : > { %s947_s27 = sand.u32 1, %s1917_s15  }
 0x492   : > { %p1920_p2 = scmp.ge.s32.totalorder %s1919_s20, 2  ;;  %s948_s24 = scalar_lea.sflag [#allocation4], %s947_s27 }
 0x494   : > { %p1180_p4 = pnand %p1920_p2, %p1649_p5 }
 0x496   : > { %p1181_p1 = pneg %p1180_p4 }
 0x498   : > { %1492 = dma.done.wait (%p1181_p1), %s948_s24, 128  }
 0x499   : > { %1494 = vsyncadd (%p1181_p1), %s948_s24, 4294967168  ;;  %s958_s13 = scalar_lea.sflag [#allocation13], %s947_s27 }
 0x49a   : > { %1496 = dma.done.wait (%p1181_p1), %s958_s13, 512  }
 0x49b   : > { %1498 = vsyncadd (%p1181_p1), %s958_s13, 4294966784  ;;  %s1921_s12 = sld [smem:[#allocation21_spill]]  ;;  %s1923_s30 = smov %s1505_s10 }
 0x49c   : > { %s1922_s29 = sld [smem:[#allocation22_spill]]  ;;  %s1924_s10 = smov %s1509_s11 }
 0x4a1   : > { %p30_p0 = scmp.ge.s32.totalorder %s1921_s12, 4  }
 0x4a2   : > { %s1925_s11 = smov %s1922_s29 }
 0x4a3   :  { %32 = sbr.rel (!%p30_p0) target bundleno = 15 (0xf), region = 149 }
 0x4a8   :  { %964 = vsyncpa [#allocation3], 1 }
 0x4a9   :  { %966 = vsyncpa [#allocation3 + $0x1], 1 }
 0x4aa   :  { %967 = vsyncpa [#allocation6], 1 }
 0x4ab   :  { %969 = vsyncpa [#allocation6 + $0x1], 1 }
 0x4ac   :  { %970 = vsyncpa [#allocation9], 1 }
 0x4ad   :  { %971 = vsyncpa [#allocation4], 1 }
 0x4ae   :  { %973 = vsyncpa [#allocation4 + $0x1], 1 }
 0x4af   :  { %974 = vsyncpa [#allocation13], 1 }
 0x4b0   :  { %976 = vsyncpa [#allocation13 + $0x1], 1 }

</bundles_post_ra>
